<compile_context>
chip_gen: v6e
topology: v6e:2x2x1
jax: 0.10.0
libtpu: 0.0.40
codegen_flags: <defaults>
</compile_context>

<pallas_src>
import functools

import numpy as np

import jax
import jax.numpy as jnp
from jax.experimental import pallas as pl
from jax.experimental.pallas import tpu as pltpu


def _round_up(x, m):
    return (x + m - 1) // m * m


def _vmem_budget_and_limit():
    """Per-generation VMEM tile budget + explicit scoped-VMEM limit.

    v5e: 128 MiB physical, 16 MiB scoped default -> raise limit to 32 MiB, ~24 MiB tiles.
    v6e: 128 MiB physical, 32 MiB scoped default -> ~40 MiB tiles, 64 MiB limit.
    v7x:  64 MiB physical per TensorCore         -> stay at ~24 MiB tiles, 32 MiB limit.
    """
    kind = ""
    try:
        kind = jax.devices()[0].device_kind.lower()
    except Exception:
        pass
    if "v6" in kind:
        return 40 << 20, 64 << 20
    return 24 << 20, 32 << 20


def _two_way_kernel(p_reg_ref, l_reg_ref, m_reg_ref,
                    p_cls_ref, l_cls_ref, wm_cls_ref, out_ref, *,
                    inv_max_label, num_rows, block_rows, w_const):
    i = pl.program_id(0)
    row = jax.lax.broadcasted_iota(jnp.int32, (block_rows, 1), 0) + i * block_rows
    row_valid = row < num_rows            # kills HBM garbage in a partial last row-tile

    # ---- regression branch: masked SSE + labelled-level count (per-lane partials) ----
    m = (m_reg_ref[...] != 0) & row_valid                                   # (R, 128)
    d = p_reg_ref[...].astype(jnp.float32) - \
        l_reg_ref[...].astype(jnp.float32) * inv_max_label
    sse = jnp.sum(jnp.where(m, d * d, 0.0), axis=0, keepdims=True)          # (1, 128)
    cnt = jnp.sum(m.astype(jnp.float32), axis=0, keepdims=True)             # (1, 128)

    # ---- classification branch: masked, class-weighted BCE-with-logits sum ----
    x = p_cls_ref[...].astype(jnp.float32)                                  # (R, 128*C)
    y = l_cls_ref[...].astype(jnp.float32)
    # numerically stable: max(x, 0) - x*y + log1p(exp(-|x|))
    bce = jnp.maximum(x, 0.0) - x * y + jnp.log1p(jnp.exp(-jnp.abs(x)))
    wm = wm_cls_ref[...].astype(jnp.float32)      # int8 mask (weights already folded in)
    if w_const is not None:                       # non-int8-representable weights path
        wm = wm * w_const
    keep = (wm != 0.0) & row_valid
    wbce = jnp.sum(jnp.where(keep, bce * wm, 0.0), axis=0, keepdims=True)   # (1, 128*C)

    # one packed, lane-dense (multiple-of-128) writeback per grid step
    out_ref[:, :, 0:128] = sse[None]
    out_ref[:, :, 128:256] = cnt[None]
    out_ref[:, :, 256:] = wbce[None]


def per_level_two_way_loss(pred, label, have_label, *,
                           normalize_label=True, max_label=256,
                           class_weights=(1.0, 2.0, 4.0)):
    """Returns (loss1 + loss2, loss1, loss2) matching PerLevelTwoWayLoss.forward.

    pred  = (pred_reg (B, N), pred_cls (B, N, C))
    label = (label_reg (B, N), label_cls (B, N, C))
    have_label: (B, N) bool mask of labelled levels.
    NOTE: cnt == 0 (no labelled level at all) yields NaN, matching the PyTorch module's
    behaviour on an empty gather.
    """
    p_reg, p_cls = pred
    l_reg, l_cls = label
    B, N = p_reg.shape
    C = p_cls.shape[-1]
    assert p_cls.shape == (B, N, C) and l_cls.shape == (B, N, C)
    assert l_reg.shape == (B, N) and have_label.shape == (B, N)
    assert len(class_weights) == C
    f32 = jnp.float32

    def _to_float(a):       # keep bf16 as bf16 (half the HBM bytes); ints -> f32
        return a if jnp.issubdtype(a.dtype, jnp.floating) else a.astype(f32)

    p_reg, l_reg = _to_float(p_reg), _to_float(l_reg)
    p_cls, l_cls = _to_float(p_cls), _to_float(l_cls)
    hl_bool = have_label.astype(bool)

    # ---- class weights folded into the int8 class mask when exactly representable ----
    w_np = np.asarray(class_weights, np.float64)
    fold_int8 = bool(np.all(w_np == np.round(w_np)) and np.all(np.abs(w_np) <= 127))
    if fold_int8:
        w_i8 = jnp.asarray(np.round(w_np).astype(np.int8))              # e.g. [1, 2, 4]
        wm3 = jnp.where(hl_bool[:, :, None], w_i8, jnp.int8(0))         # (B, N, C) int8
        w_const = None
    else:
        wm3 = hl_bool[:, :, None].astype(jnp.int8) * jnp.ones((1, 1, C), jnp.int8)
        w_const = np.tile(w_np.astype(np.float32), 128).reshape(1, 128 * C)  # const row

    # ---- lane-dense slabs: 128 levels per row -> all 128 lanes useful per vreg ----
    W_reg, W_cls = 128, 128 * C
    L = B * N
    Lp = _round_up(L, 128)
    rows = Lp // 128

    def _flat(a, total):
        a = a.reshape(-1)                         # contiguous -> free
        if a.shape[0] != total:                   # no-op when B*N % 128 == 0
            a = jnp.pad(a, (0, total - a.shape[0]))
        return a

    m_flat = _flat(hl_bool.astype(jnp.int8), Lp).reshape(rows, W_reg)
    pr_flat = _flat(p_reg, Lp).reshape(rows, W_reg)
    lr_flat = _flat(l_reg, Lp).reshape(rows, W_reg)
    pc_flat = _flat(p_cls, Lp * C).reshape(rows, W_cls)
    lc_flat = _flat(l_cls, Lp * C).reshape(rows, W_cls)
    wm_flat = _flat(wm3, Lp * C).reshape(rows, W_cls)

    reg_is = jnp.dtype(p_reg.dtype).itemsize
    cls_is = jnp.dtype(p_cls.dtype).itemsize
    OUTW = 256 + W_cls                                   # sse(128) + cnt(128) + bce(128*C)

    # ---- VMEM-aware row tile: padded footprint == logical footprint by construction
    #      (lane dims are multiples of 128, sublane tile is a multiple of 32), plus the
    #      double-buffered packed output block. ----
    vmem_budget, vmem_limit = _vmem_budget_and_limit()
    per_row = W_reg * (2 * reg_is + 1) + W_cls * (2 * cls_is + 1)   # bytes / row / buffer
    out_vmem = 2 * 8 * OUTW * 4                                     # double-buffered out
    r_cap = max(32, ((vmem_budget - out_vmem) // (2 * per_row)) // 32 * 32)

    if rows <= min(r_cap, 1024):
        R = rows                        # single step; block dims == full array dims
    else:
        # keep >= 4 tiles when possible so v7x megacore gets balanced work per TensorCore
        R = min(r_cap, max(32, _round_up(pl.cdiv(rows, 4), 32)))
    G = pl.cdiv(rows, R)

    inv_max = (1.0 / float(max_label)) if normalize_label else 1.0
    kernel = functools.partial(_two_way_kernel, inv_max_label=inv_max,
                               num_rows=rows, block_rows=R, w_const=w_const)

    in_specs = [
        pl.BlockSpec((R, W_reg), lambda i: (i, 0)),   # pred_reg   (lane-dense)
        pl.BlockSpec((R, W_reg), lambda i: (i, 0)),   # label_reg
        pl.BlockSpec((R, W_reg), lambda i: (i, 0)),   # level mask (int8)
        pl.BlockSpec((R, W_cls), lambda i: (i, 0)),   # pred_cls   (lane-dense)
        pl.BlockSpec((R, W_cls), lambda i: (i, 0)),   # label_cls
        pl.BlockSpec((R, W_cls), lambda i: (i, 0)),   # mask*weight (int8 {0,1,2,4})
    ]
    out_specs = pl.BlockSpec((1, 1, OUTW), lambda i: (i, 0, 0))
    out_shape = jax.ShapeDtypeStruct((G, 1, OUTW), f32)

    cost = pl.CostEstimate(
        flops=int(6 * L + 10 * L * C),
        transcendentals=int(2 * L * C),
        bytes_accessed=int(Lp * (2 * reg_is + 1) + Lp * C * (2 * cls_is + 1)
                           + G * OUTW * 4),
    )

    partials = pl.pallas_call(
        kernel,
        out_shape=out_shape,
        grid=(G,),
        in_specs=in_specs,
        out_specs=out_specs,
        compiler_params=pltpu.CompilerParams(
            dimension_semantics=("parallel",),     # no cross-step dependency
            vmem_limit_bytes=vmem_limit,
        ),
        cost_estimate=cost,
    )(pr_flat, lr_flat, m_flat, pc_flat, lc_flat, wm_flat)

    # tiny scalar epilogue over G * OUTW floats
    sse = jnp.sum(partials[:, 0, 0:128])
    cnt = jnp.sum(partials[:, 0, 128:256])
    bce = jnp.sum(partials[:, 0, 256:])
    loss_mse = sse / cnt
    loss_bce = bce / (cnt * C)
    return loss_mse + loss_bce, loss_mse, loss_bce


def _reference(pred, label, have_label, *, normalize_label=True, max_label=256,
               class_weights=(1.0, 2.0, 4.0)):
    p_reg, p_cls = pred
    l_reg, l_cls = label
    mf = have_label.astype(jnp.float32)
    cnt = jnp.sum(mf)

    lbl = l_reg.astype(jnp.float32)
    if normalize_label:
        lbl = lbl / max_label
    d = (p_reg.astype(jnp.float32) - lbl) * mf
    loss_mse = jnp.sum(d * d) / cnt

    w = jnp.asarray(class_weights, jnp.float32)
    x = p_cls.astype(jnp.float32)
    y = l_cls.astype(jnp.float32)
    bce = jnp.maximum(x, 0.0) - x * y + jnp.log1p(jnp.exp(-jnp.abs(x)))
    loss_bce = jnp.sum(bce * w * mf[:, :, None]) / (cnt * w.shape[0])
    return loss_mse + loss_bce, loss_mse, loss_bce


if __name__ == "__main__":
    key = jax.random.PRNGKey(0)
    k1, k2, k3, k4, k5 = jax.random.split(key, 5)

    # small shapes: 70 samples, 16 levels, 3 classes (exercises the padded-tail path)
    B, N, C = 70, 16, 3
    p_reg = jax.random.normal(k1, (B, N), dtype=jnp.float32)
    l_reg = jax.random.uniform(k2, (B, N), dtype=jnp.float32, minval=0.0, maxval=256.0)
    p_cls = jax.random.normal(k3, (B, N, C), dtype=jnp.float32) * 3.0
    l_cls = jax.random.bernoulli(k4, p=0.5, shape=(B, N, C)).astype(jnp.float32)
    have_label = jax.random.bernoulli(k5, p=0.6, shape=(B, N))

    total, l1, l2 = per_level_two_way_loss(
        (p_reg, p_cls), (l_reg, l_cls), have_label)
    total = jax.block_until_ready(total)

    rt, r1, r2 = _reference((p_reg, p_cls), (l_reg, l_cls), have_label)
    assert jnp.allclose(l1, r1, rtol=1e-5, atol=1e-6), (l1, r1)
    assert jnp.allclose(l2, r2, rtol=1e-5, atol=1e-6), (l2, r2)
    assert jnp.allclose(total, rt, rtol=1e-5, atol=1e-6), (total, rt)

    print("KERNEL_OK")
</pallas_src>

<mosaic_0001>
module attributes {stable_mosaic.version = 11 : i64} {
  func.func @_two_way_kernel(%arg0: i32, %arg1: memref<9x128xf32, #tpu.memory_space<vmem>>, %arg2: memref<9x128xf32, #tpu.memory_space<vmem>>, %arg3: memref<9x128xi8, #tpu.memory_space<vmem>>, %arg4: memref<9x384xf32, #tpu.memory_space<vmem>>, %arg5: memref<9x384xf32, #tpu.memory_space<vmem>>, %arg6: memref<9x384xi8, #tpu.memory_space<vmem>>, %arg7: memref<1x1x640xf32, #tpu.memory_space<vmem>>) attributes {dimension_semantics = [#tpu.dimension_semantics<parallel>], iteration_bounds = array<i64: 1>, scalar_prefetch = 0 : i64, scratch_operands = 0 : i64, tpu.core_type = #tpu.core_type<tc>, window_params = [{transform_indices = @transform_0, window_bounds = array<i64: 9, 128>}, {transform_indices = @transform_1, window_bounds = array<i64: 9, 128>}, {transform_indices = @transform_2, window_bounds = array<i64: 9, 128>}, {transform_indices = @transform_3, window_bounds = array<i64: 9, 384>}, {transform_indices = @transform_4, window_bounds = array<i64: 9, 384>}, {transform_indices = @transform_5, window_bounds = array<i64: 9, 384>}, {transform_indices = @transform_6, window_bounds = array<i64: 1, 1, 640>}]} {
    %0 = tpu.iota {dimensions = array<i32: 0>} : vector<9x1xi32>
    %c9_i32 = arith.constant 9 : i32
    %1 = arith.muli %arg0, %c9_i32 : i32
    %2 = vector.broadcast %1 : i32 to vector<9x1xi32>
    %3 = arith.addi %0, %2 : vector<9x1xi32>
    %c9_i32_0 = arith.constant 9 : i32
    %4 = vector.broadcast %c9_i32_0 : i32 to vector<9x1xi32>
    %5 = arith.cmpi slt, %3, %4 : vector<9x1xi32>
    %c0 = arith.constant 0 : index
    %c0_1 = arith.constant 0 : index
    %6 = vector.load %arg3[%c0, %c0_1] : memref<9x128xi8, #tpu.memory_space<vmem>>, vector<9x128xi8>
    %c0_i8 = arith.constant 0 : i8
    %7 = vector.broadcast %c0_i8 : i8 to vector<9x128xi8>
    %8 = arith.cmpi ne, %6, %7 : vector<9x128xi8>
    %9 = vector.broadcast %5 : vector<9x1xi1> to vector<9x128xi1>
    %10 = arith.andi %8, %9 : vector<9x128xi1>
    %c0_2 = arith.constant 0 : index
    %c0_3 = arith.constant 0 : index
    %11 = vector.load %arg1[%c0_2, %c0_3] : memref<9x128xf32, #tpu.memory_space<vmem>>, vector<9x128xf32>
    %c0_4 = arith.constant 0 : index
    %c0_5 = arith.constant 0 : index
    %12 = vector.load %arg2[%c0_4, %c0_5] : memref<9x128xf32, #tpu.memory_space<vmem>>, vector<9x128xf32>
    %cst = arith.constant 3.906250e-03 : f32
    %13 = vector.broadcast %cst : f32 to vector<9x128xf32>
    %14 = arith.mulf %12, %13 : vector<9x128xf32>
    %15 = arith.subf %11, %14 : vector<9x128xf32>
    %16 = arith.mulf %15, %15 : vector<9x128xf32>
    %cst_6 = arith.constant 0.000000e+00 : f32
    %17 = vector.broadcast %cst_6 : f32 to vector<9x128xf32>
    %18 = arith.select %10, %16, %17 : vector<9x128xi1>, vector<9x128xf32>
    %cst_7 = arith.constant dense<0.000000e+00> : vector<128xf32>
    %19 = vector.multi_reduction <add>, %18, %cst_7 [0] : vector<9x128xf32> to vector<128xf32>
    %20 = vector.shape_cast %19 : vector<128xf32> to vector<1x128xf32>
    %21 = arith.extui %10 : vector<9x128xi1> to vector<9x128xi32>
    %22 = arith.sitofp %21 : vector<9x128xi32> to vector<9x128xf32>
    %cst_8 = arith.constant dense<0.000000e+00> : vector<128xf32>
    %23 = vector.multi_reduction <add>, %22, %cst_8 [0] : vector<9x128xf32> to vector<128xf32>
    %24 = vector.shape_cast %23 : vector<128xf32> to vector<1x128xf32>
    %c0_9 = arith.constant 0 : index
    %c0_10 = arith.constant 0 : index
    %25 = vector.load %arg4[%c0_9, %c0_10] : memref<9x384xf32, #tpu.memory_space<vmem>>, vector<9x384xf32>
    %c0_11 = arith.constant 0 : index
    %c0_12 = arith.constant 0 : index
    %26 = vector.load %arg5[%c0_11, %c0_12] : memref<9x384xf32, #tpu.memory_space<vmem>>, vector<9x384xf32>
    %cst_13 = arith.constant 0.000000e+00 : f32
    %27 = vector.broadcast %cst_13 : f32 to vector<9x384xf32>
    %28 = arith.maximumf %25, %27 : vector<9x384xf32>
    %29 = arith.mulf %25, %26 : vector<9x384xf32>
    %30 = arith.subf %28, %29 : vector<9x384xf32>
    %31 = math.absf %25 : vector<9x384xf32>
    %cst_14 = arith.constant 0.000000e+00 : f32
    %32 = vector.broadcast %cst_14 : f32 to vector<9x384xf32>
    %33 = arith.subf %32, %31 : vector<9x384xf32>
    %34 = math.exp %33 : vector<9x384xf32>
    %35 = math.log1p %34 : vector<9x384xf32>
    %36 = arith.addf %30, %35 : vector<9x384xf32>
    %c0_15 = arith.constant 0 : index
    %c0_16 = arith.constant 0 : index
    %37 = vector.load %arg6[%c0_15, %c0_16] : memref<9x384xi8, #tpu.memory_space<vmem>>, vector<9x384xi8>
    %38 = arith.sitofp %37 : vector<9x384xi8> to vector<9x384xf32>
    %cst_17 = arith.constant 0.000000e+00 : f32
    %39 = vector.broadcast %cst_17 : f32 to vector<9x384xf32>
    %40 = arith.cmpf one, %38, %39 : vector<9x384xf32>
    %41 = vector.broadcast %5 : vector<9x1xi1> to vector<9x384xi1>
    %42 = arith.andi %40, %41 : vector<9x384xi1>
    %43 = arith.mulf %36, %38 : vector<9x384xf32>
    %cst_18 = arith.constant 0.000000e+00 : f32
    %44 = vector.broadcast %cst_18 : f32 to vector<9x384xf32>
    %45 = arith.select %42, %43, %44 : vector<9x384xi1>, vector<9x384xf32>
    %cst_19 = arith.constant dense<0.000000e+00> : vector<384xf32>
    %46 = vector.multi_reduction <add>, %45, %cst_19 [0] : vector<9x384xf32> to vector<384xf32>
    %47 = vector.shape_cast %46 : vector<384xf32> to vector<1x384xf32>
    %48 = vector.shape_cast %20 : vector<1x128xf32> to vector<1x1x128xf32>
    %c0_20 = arith.constant 0 : index
    %c0_21 = arith.constant 0 : index
    %c0_22 = arith.constant 0 : index
    %49 = vector.load %arg7[%c0_20, %c0_21, %c0_22] : memref<1x1x640xf32, #tpu.memory_space<vmem>>, vector<1x1x128xf32>
    tpu.vector_store %arg7[%c0_20, %c0_21, %c0_22], %48 {strides = array<i32>} : memref<1x1x640xf32, #tpu.memory_space<vmem>>, vector<1x1x128xf32>,
    %50 = vector.shape_cast %24 : vector<1x128xf32> to vector<1x1x128xf32>
    %c0_23 = arith.constant 0 : index
    %c0_24 = arith.constant 0 : index
    %c128 = arith.constant 128 : index
    %51 = vector.load %arg7[%c0_23, %c0_24, %c128] : memref<1x1x640xf32, #tpu.memory_space<vmem>>, vector<1x1x128xf32>
    tpu.vector_store %arg7[%c0_23, %c0_24, %c128], %50 {strides = array<i32>} : memref<1x1x640xf32, #tpu.memory_space<vmem>>, vector<1x1x128xf32>,
    %52 = vector.shape_cast %47 : vector<1x384xf32> to vector<1x1x384xf32>
    %c0_25 = arith.constant 0 : index
    %c0_26 = arith.constant 0 : index
    %c256 = arith.constant 256 : index
    %53 = vector.load %arg7[%c0_25, %c0_26, %c256] : memref<1x1x640xf32, #tpu.memory_space<vmem>>, vector<1x1x384xf32>
    tpu.vector_store %arg7[%c0_25, %c0_26, %c256], %52 {strides = array<i32>} : memref<1x1x640xf32, #tpu.memory_space<vmem>>, vector<1x1x384xf32>,
    return
  }
  func.func @transform_0(%arg0: i32) -> (i32, i32) {
    %c0_i32 = arith.constant 0 : i32
    %c0_i32_0 = arith.constant 0 : i32
    return %arg0, %c0_i32 : i32, i32
  }
  func.func @transform_1(%arg0: i32) -> (i32, i32) {
    %c0_i32 = arith.constant 0 : i32
    %c0_i32_0 = arith.constant 0 : i32
    return %arg0, %c0_i32 : i32, i32
  }
  func.func @transform_2(%arg0: i32) -> (i32, i32) {
    %c0_i32 = arith.constant 0 : i32
    %c0_i32_0 = arith.constant 0 : i32
    return %arg0, %c0_i32 : i32, i32
  }
  func.func @transform_3(%arg0: i32) -> (i32, i32) {
    %c0_i32 = arith.constant 0 : i32
    %c0_i32_0 = arith.constant 0 : i32
    return %arg0, %c0_i32 : i32, i32
  }
  func.func @transform_4(%arg0: i32) -> (i32, i32) {
    %c0_i32 = arith.constant 0 : i32
    %c0_i32_0 = arith.constant 0 : i32
    return %arg0, %c0_i32 : i32, i32
  }
  func.func @transform_5(%arg0: i32) -> (i32, i32) {
    %c0_i32 = arith.constant 0 : i32
    %c0_i32_0 = arith.constant 0 : i32
    return %arg0, %c0_i32 : i32, i32
  }
  func.func @transform_6(%arg0: i32) -> (i32, i32, i32) {
    %c0_i32 = arith.constant 0 : i32
    %c0_i32_0 = arith.constant 0 : i32
    %c0_i32_1 = arith.constant 0 : i32
    return %arg0, %c0_i32, %c0_i32_0 : i32, i32, i32
  }
}

</mosaic_0001>

<bundles_post_ra>
// kernel: tpu_custom_call.1
= control target key start
LH: loop header
LB: loop body
LE: loop exit
PB: predicated region body
PF: predicated region fallthrough
CT: control target
= control target key end

     0   :  { %11 = vsyncpa [#allocation3], 0  ;;  %s812_s0 = inlined_call_operand.hbm [shape: f32[9,128], index: 0, kind: input, shape index: {}]   ;;  %s813_s1 = inlined_call_operand.hbm [shape: f32[9,128], index: 1, kind: input, shape index: {}]   ;;  %s814_s2 = inlined_call_operand.hbm [shape: s8[9,128], index: 2, kind: input, shape index: {}]   ;;  %s815_s3 = inlined_call_operand.hbm [shape: f32[9,384], index: 3, kind: input, shape index: {}]   ;;  %s816_s4 = inlined_call_operand.hbm [shape: f32[9,384], index: 4, kind: input, shape index: {}]   ;;  %s817_s5 = inlined_call_operand.hbm [shape: s8[9,384], index: 5, kind: input, shape index: {}]   ;;  %s818_s6 = inlined_call_operand.hbm [shape: f32[1,1,640], index: 6, kind: output, shape index: {}]  }
   0x1   :  { %12 = vsyncpa [#allocation6], 0 }
   0x2   :  { %13 = vsyncpa [#allocation9], 0 }
   0x3   :  { %14 = vsyncpa [#allocation12], 0 }
   0x4   :  { %15 = vsyncpa [#allocation4], 0  ;;  %s595_s21 = smov [#allocation5]   ;;  %s596_s23 = smov [#allocation8]  }
   0x5   :  { %s33_s22 = sshll.u32 %s595_s21, 4  ;;  %s57_s24 = sshll.u32 %s596_s23, 4  ;;  %s34_s22 = int_to_ptr.vmem [resolvable:$true] %s33_s22  ;;  %s58_s24 = int_to_ptr.vmem [resolvable:$true] %s57_s24 }
   0x6   :  { %s453_s25 = scalar_lea.vmem %s34_s22, 256  ;;  %p458_p1 = scmp.lt.s32.totalorder %s34_s22, %s34_s22 }
   0x7   :  { %p454_p0 = scmp.ne.s32.totalorder %s34_s22, %s453_s25  ;;  %p459_p2 = scmp.lt.s32.totalorder %s453_s25, %s453_s25 }
   0x9   :  { %p460_p3 = por %p459_p2, %p458_p1 }
   0xb   :  { %p461_p4 = pnand %p460_p3, %p454_p0 }
   0xd   :  { %464 = shalt.err (!%p461_p4)
}
   0xe   :  { %s597_s26 = smov 128   ;;  %s598_s27 = smov 8  }
   0xf   :  { %39 = dma.hbm_to_vmem [thread:$0]  %s813_s1, 256, %s34_s22, [#allocation6], %s597_s26, %s597_s26, %s598_s27  }
  0x10   :  { %s473_s30 = scalar_lea.vmem %s58_s24, 768  ;;  %p478_p6 = scmp.lt.s32.totalorder %s58_s24, %s58_s24 }
  0x11   :  { %p474_p5 = scmp.ne.s32.totalorder %s58_s24, %s473_s30  ;;  %p479_p7 = scmp.lt.s32.totalorder %s473_s30, %s473_s30 }
  0x13   :  { %p480_p8 = por %p479_p7, %p478_p6 }
  0x15   :  { %p481_p9 = pnand %p480_p8, %p474_p5 }
  0x17   :  { %484 = shalt.err (!%p481_p9)
}
  0x18   :  { %s599_s7 = smov 384   ;;  %s600_s8 = smov 24  }
  0x19   :  { %63 = dma.hbm_to_vmem [thread:$0]  %s815_s3, 768, %s58_s24, [#allocation9], %s599_s7, %s599_s7, %s600_s8  }
  0x1a   :  { %s601_s11 = smov [#allocation2]   ;;  %s602_s13 = smov [#allocation7]  }
  0x1b   :  { %s21_s12 = sshll.u32 %s601_s11, 4  ;;  %s45_s1 = sshll.u32 %s602_s13, 4  ;;  %s22_s12 = int_to_ptr.vmem [resolvable:$true] %s21_s12  ;;  %s46_s1 = int_to_ptr.vmem [resolvable:$true] %s45_s1 }
  0x1c   :  { %s493_s14 = scalar_lea.vmem %s22_s12, 256  ;;  %p498_p11 = scmp.lt.s32.totalorder %s22_s12, %s22_s12 }
  0x1d   :  { %p494_p10 = scmp.ne.s32.totalorder %s22_s12, %s493_s14  ;;  %p499_p12 = scmp.lt.s32.totalorder %s493_s14, %s493_s14 }
  0x1f   :  { %p500_p13 = por %p499_p12, %p498_p11 }
  0x21   :  { %p501_p0 = pnand %p500_p13, %p494_p10 }
  0x23   :  { %504 = shalt.err (!%p501_p0)
}
  0x24   :  { %27 = dma.hbm_to_vmem [thread:$0]  %s812_s0, 256, %s22_s12, [#allocation3], %s597_s26, %s597_s26, %s598_s27  }
  0x25   :  { %s513_s17 = scalar_lea.vmem %s46_s1, 64  ;;  %p518_p2 = scmp.lt.s32.totalorder %s46_s1, %s46_s1 }
  0x26   :  { %p514_p1 = scmp.ne.s32.totalorder %s46_s1, %s513_s17  ;;  %p519_p3 = scmp.lt.s32.totalorder %s513_s17, %s513_s17 }
  0x28   :  { %p520_p4 = por %p519_p3, %p518_p2 }
  0x2a   :  { %p521_p5 = pnand %p520_p4, %p514_p1 }
  0x2c   :  { %524 = shalt.err (!%p521_p5)
}
  0x2d   :  { %s603_s3 = smov 32   ;;  %s604_s18 = smov 2  }
  0x2e   :  { %51 = dma.hbm_to_vmem [thread:$0]  %s814_s2, 64, %s46_s1, [#allocation6], %s603_s3, %s603_s3, %s604_s18  }
  0x2f   :  { %s605_s21 = smov [#allocation10]   ;;  %s606_s23 = smov [#allocation11]  }
  0x30   :  { %s69_s22 = sshll.u32 %s605_s21, 4  ;;  %s81_s24 = sshll.u32 %s606_s23, 4  ;;  %s70_s22 = int_to_ptr.vmem [resolvable:$true] %s69_s22  ;;  %s82_s24 = int_to_ptr.vmem [resolvable:$true] %s81_s24 }
  0x31   :  { %s533_s0 = scalar_lea.vmem %s70_s22, 768  ;;  %p538_p7 = scmp.lt.s32.totalorder %s70_s22, %s70_s22 }
  0x32   :  { %p534_p6 = scmp.ne.s32.totalorder %s70_s22, %s533_s0  ;;  %p539_p8 = scmp.lt.s32.totalorder %s533_s0, %s533_s0 }
  0x34   :  { %p540_p9 = por %p539_p8, %p538_p7 }
  0x36   :  { %p541_p10 = pnand %p540_p9, %p534_p6 }
  0x38   :  { %544 = shalt.err (!%p541_p10)
}
  0x39   :  { %75 = dma.hbm_to_vmem [thread:$0]  %s816_s4, 768, %s70_s22, [#allocation9], %s599_s7, %s599_s7, %s600_s8  }
  0x3a   :  { %s553_s2 = scalar_lea.vmem %s82_s24, 192  ;;  %p558_p12 = scmp.lt.s32.totalorder %s82_s24, %s82_s24 }
  0x3b   :  { %p554_p11 = scmp.ne.s32.totalorder %s82_s24, %s553_s2  ;;  %p559_p13 = scmp.lt.s32.totalorder %s553_s2, %s553_s2 }
  0x3d   :  { %p560_p0 = por %p559_p13, %p558_p12 }
  0x3f   :  { %p561_p1 = pnand %p560_p0, %p554_p11 }
  0x41   :  { %564 = shalt.err (!%p561_p1)
}
  0x42   :  { %s607_s27 = smov 96   ;;  %s608_s28 = smov 6  }
  0x43   :  { %87 = dma.hbm_to_vmem [thread:$0]  %s817_s5, 192, %s82_s24, [#allocation12], %s607_s27, %s607_s27, %s608_s28  }
  0x44   :  { %585 = dma.done.wait [#allocation3], 256  }
  0x45   :  { %586 = vsyncadd [#allocation3], 4294967040 }
  0x46   :  { %587 = dma.done.wait [#allocation6], 320  }
  0x47   :  { %588 = vsyncadd [#allocation6], 4294966976 }
  0x48   :  { %589 = dma.done.wait [#allocation9], 1536  }
  0x49   :  { %590 = vsyncadd [#allocation9], 4294965760 }
  0x4a   :  { %591 = dma.done.wait [#allocation12], 192  }
  0x4b   :  { %592 = vsyncadd [#allocation12], 4294967104  ;;  %v108_v0 = vlaneseq  ;;  %vm609_vm0 = vmmov 1   ;;  %v117_v3 = vld [vmem:[#allocation7] sm:$0x3]  ;;  %v133_v7 = vld [vmem:[#allocation5] sm:$0xff] }
  0x4c   :  { %vm125_vm1 = vmpackc.low %vm609_vm0, %vm609_vm0  ;;  %v118_v4 = vld [vmem:[#allocation7 + $0x2] sm:$0x1]  ;;  %vm119_vm5 = vnez %v117_v3  ;;  %v132_v6 = vld [vmem:[#allocation2 + $0x8] sm:$0x1]  ;;  %v135_v9 = vmul.f32 0.00390625, %v133_v7  ;;  %v610_v11 = vmov 0  }
  0x4d   :  { %v674_v1 = vshrl.u32 %v108_v0, 7  ;;  %vm126_vm3 = vmpackc.even %vm125_vm1, %vm125_vm1  ;;  %vm120_vm6 = vnez %v118_v4  ;;  %v131_v5 = vld [vmem:[#allocation2] sm:$0xff]  ;;  %v134_v8 = vld [vmem:[#allocation5 + $0x8] sm:$0x1]  ;;  %vm149_vm12 = vcmask 1040384   ;;  %v611_v31 = vmov 0.0  }
  0x4e   :  { %vm129_vm8 = vmand %vm119_vm5, %vm126_vm3  ;;  %v136_v10 = vmul.f32 0.00390625, %v134_v8  ;;  %v683_v15 = vld [vmem:[#allocation8 + $0x18] sm:$0x1]  ;;  %v137_v16 = vsub.f32 %v131_v5, %v135_v9  ;;  %v685_v19 = vld [vmem:[#allocation8 + $0x20] sm:$0x1]  ;;  %vm704_vm13 = vcmp.lt.s32.totalorder %v108_v0, 128 }
  0x4f   :  { %v677_v2 = vadd.s32 8, %v674_v1  ;;  %v141_v12 = vsel %vm129_vm8, 16843009, %v610_v11  ;;  %v203_v22 = vand.u32 2147483647, %v683_v15  ;;  %v691_v38 = vld [vmem:[#allocation8] sm:$0xff] }
  0x50   :  { %v143_v14 = vunpack.c.0.s8 %v141_v12  ;;  %v138_v17 = vsub.f32 %v132_v6, %v136_v10  ;;  %v139_v20 = vmul.f32 %v137_v16, %v137_v16  ;;  %v204_v23 = vand.u32 2147483647, %v685_v19  ;;  %v693_v39 = vld [vmem:[#allocation8 + $0x8] sm:$0xff]  ;;  %v695_v42 = vld [vmem:[#allocation8 + $0x10] sm:$0xff]  ;;  %s613_s4 = smov [#allocation13]  }
  0x51   :  { %vm116_vm2 = vcmp.lt.s32.totalorder %v677_v2, 9  ;;  %v209_v26 = vsub.f32 0.0, %v203_v22  ;;  %v697_v43 = vld [vmem:[#allocation8 + $0x28] sm:$0x1]  ;;  %v200_v45 = vand.u32 2147483647, %v691_v38 }
  0x52   :  { %vm127_vm4 = vmpackc.low %vm116_vm2, %vm116_vm2  ;;  %vm145_vm10 = vcmp.ne.s32.totalorder %v143_v14, 0  ;;  %v140_v21 = vmul.f32 %v138_v17, %v138_v17  ;;  %v210_v28 = vsub.f32 0.0, %v204_v23  ;;  %v201_v46 = vand.u32 2147483647, %v693_v39  ;;  %v285_v10 = vld [vmem:[#allocation11 + $0x6] sm:$0x15] }
  0x53   :  { %vm128_vm7 = vmpackc.even %vm127_vm4, %vm127_vm4  ;;  %v147_v24 = vsel %vm145_vm10, %v139_v20, 0.0  ;;  %v218_v30 = vmul.f32 1.442695, %v209_v26  ;;  %v400_v32 = vsel %vm145_vm10, 1.0, %v611_v31  ;;  %v202_v49 = vand.u32 2147483647, %v695_v42 }
  0x54   :  { %vm130_vm9 = vmand %vm120_vm6, %vm128_vm7  ;;  %v220_v33 = vmul.f32 1.442695, %v210_v28  ;;  %v205_v50 = vand.u32 2147483647, %v697_v43  ;;  %v206_v52 = vsub.f32 0.0, %v200_v45  ;;  %v207_v53 = vsub.f32 0.0, %v201_v46 }
  0x55   :  { %v142_v13 = vsel %vm130_vm9, 16843009, %v610_v11  ;;  %421 = vpow2.f32 %v218_v30  ;;  %v208_v55 = vsub.f32 0.0, %v202_v49  ;;  %v179_v11 = vld [vmem:[#allocation10 + $0x18] sm:$0x1]  ;;  %v185_v14 = vmax.f32 %v683_v15, 0.0 }
  0x56   :  { %v144_v18 = vunpack.c.0.s8 %v142_v13  ;;  %423 = vpow2.f32 %v220_v33  ;;  %v211_v56 = vsub.f32 0.0, %v205_v50  ;;  %v212_v59 = vmul.f32 1.442695, %v206_v52  ;;  %v180_v12 = vld [vmem:[#allocation10 + $0x20] sm:$0x1]  ;;  %v177_v50 = vld [vmem:[#allocation10 + $0x8] sm:$0xff] }
  0x57   :  { %v214_v60 = vmul.f32 1.442695, %v207_v53  ;;  %v216_v62 = vmul.f32 1.442695, %v208_v55  ;;  %v289_v16 = vunpack.c.0.s8 %v285_v10  ;;  %v191_v20 = vmul.f32 %v179_v11, %v683_v15  ;;  %v178_v52 = vld [vmem:[#allocation10 + $0x10] sm:$0xff]  ;;  %s388_s5 = sshll.u32 %s613_s4, 4  ;;  %s389_s5 = int_to_ptr.vmem [resolvable:$true] %s388_s5 }
  0x58   :  { %vm146_vm11 = vcmp.ne.s32.totalorder %v144_v18, 0  ;;  %v222_v63 = vmul.f32 1.442695, %v211_v56  ;;  %425 = vpow2.f32 %v212_v59  ;;  %v186_v18 = vmax.f32 %v685_v19, 0.0  ;;  %v181_v55 = vld [vmem:[#allocation10 + $0x28] sm:$0x1]  ;;  %p570_p3 = scmp.lt.s32.totalorder %s389_s5, %s389_s5 }
  0x59   :  { %v148_v25 = vsel %vm146_vm11, %v140_v21, 0.0  ;;  %v401_v34 = vsel %vm146_vm11, 1.0, %v611_v31  ;;  %427 = vpow2.f32 %v214_v60  ;;  %v192_v21 = vmul.f32 %v180_v12, %v685_v19  ;;  %s565_s7 = scalar_lea.vmem %s389_s5, 80  ;;  %s569_s8 = scalar_lea.vmem %s389_s5, 96 }
  0x5a   :  { %v150_v27 = vsel %vm149_vm12, %v148_v25, 0.0  ;;  %v162_v36 = vsel %vm149_vm12, %v401_v34, 0.0  ;;  %429 = vpow2.f32 %v216_v62  ;;  %v291_v30 = vunpack.c.2.s8 %v285_v10  ;;  %p566_p2 = scmp.ne.s32.totalorder %s389_s5, %s565_s7  ;;  %p571_p4 = scmp.lt.s32.totalorder %s569_s8, %s565_s7 }
  0x5b   :  { %v151_v29 = vadd.f32 %v150_v27, %v147_v24  ;;  %v163_v37 = vadd.f32 %v400_v32, %v162_v36  ;;  %431 = vpow2.f32 %v222_v63  ;;  %v295_v33 = vcvt.s32.f32 %v289_v16 }
  0x5c   :  { %v197_v19 = vsub.f32 %v185_v14, %v191_v20  ;;  %v198_v34 = vsub.f32 %v186_v18, %v192_v21  ;;  %v736_v49 = vcvt.s32.f32 %v291_v30  ;;  %v182_v56 = vmax.f32 %v691_v38, 0.0  ;;  %p572_p5 = por %p571_p4, %p570_p3 }
  0x5d   :  { %v152_v35 = vrot.slane %v151_v29, 4  ;;  %v164_v41 = vrot.slane %v163_v37, 4  ;;  %vm301_vm0 = vcmp.ne.f32.partialorder %v295_v33, 0.0  ;;  %v183_v60 = vmax.f32 %v693_v39, 0.0 }
  0x5e   :  { %v184_v63 = vmax.f32 %v695_v42, 0.0  ;;  %vm303_vm3 = vcmp.ne.f32.partialorder %v736_v49, 0.0  ;;  %vm762_vm4 = vmand %vm301_vm0, %vm116_vm2  ;;  %p573_p6 = pnand %p572_p5, %p566_p2 }
  0x5f   :  { %v153_v40 = vadd.f32 %v152_v35, %v151_v29  ;;  %v165_v47 = vadd.f32 %v164_v41, %v163_v37  ;;  %v290_v29 = vunpack.c.1.s8 %v285_v10  ;;  %v176_v41 = vld [vmem:[#allocation10] sm:$0xff] }
  0x60   :  { %v188_v57 = vmul.f32 %v176_v41, %v691_v38 }
  0x61   :  { %v154_v44 = vrot.slane %v153_v40, 2  ;;  %v166_v51 = vrot.slane %v165_v47, 2 }
  0x62   :  { %v422_v4 = vpop.eup %421  ;;  %v194_v10 = vsub.f32 %v182_v56, %v188_v57 }
  0x63   :  { %v155_v48 = vadd.f32 %v154_v44, %v153_v40  ;;  %v167_v58 = vadd.f32 %v166_v51, %v165_v47  ;;  %v424_v6 = vpop.eup %423  ;;  %v251_v7 = vadd.f32 1.0, %v422_v4  ;;  %v254_v9 = vmul.f32 -0.5, %v422_v4 }
  0x64   :  { %v260_v8 = vadd.f32 1.0, %v424_v6  ;;  %v263_v13 = vmul.f32 -0.5, %v424_v6  ;;  %v257_v24 = vand.u32 2147483647, %v422_v4  ;;  %v266_v28 = vand.u32 2147483647, %v424_v6 }
  0x65   :  { %v156_v54 = vrot.slane %v155_v48, 1  ;;  %v168_v3 = vrot.slane %v167_v58, 1  ;;  %433 = vlog2.f32 %v251_v7  ;;  %v713_v17 = vpop.eup %425  ;;  %v255_v22 = vadd.f32 1.0, %v254_v9 }
  0x66   :  { %435 = vlog2.f32 %v260_v8  ;;  %v718_v23 = vpop.eup %427  ;;  %v264_v25 = vadd.f32 1.0, %v263_v13  ;;  %v224_v26 = vadd.f32 1.0, %v713_v17  ;;  %vm727_vm14 = vcmp.lt.f32.partialorder %v257_v24, 0.0004427343 }
  0x67   :  { %v157_v61 = vadd.f32 %v156_v54, %v155_v48  ;;  %v169_v5 = vadd.f32 %v168_v3, %v167_v58  ;;  %v721_v27 = vpop.eup %429  ;;  %v233_v31 = vadd.f32 1.0, %v718_v23  ;;  %v256_v35 = vmul.f32 %v422_v4, %v255_v22 }
  0x68   :  { %v724_v32 = vpop.eup %431  ;;  %437 = vlog2.f32 %v224_v26  ;;  %v242_v15 = vadd.f32 1.0, %v721_v27  ;;  %v265_v40 = vmul.f32 %v424_v6, %v264_v25  ;;  %vm732_vm15 = vcmp.lt.f32.partialorder %v266_v28, 0.0004427343 }
  0x69   :  { %350 = vst.msk [vmem:[#allocation13] sm:$0x1] %vm704_vm13, %v157_v61  ;;  %351 = vst.msk [vmem:[#allocation13 + $0x1] sm:$0x1] %vm704_vm13, %v169_v5  ;;  %439 = vlog2.f32 %v233_v31  ;;  %v269_v44 = vadd.f32 1.0, %v724_v32  ;;  %v296_v48 = vcvt.s32.f32 %v290_v29  ;;  %v227_v53 = vmul.f32 -0.5, %v713_v17 }
  0x6a   :  { %441 = vlog2.f32 %v242_v15  ;;  %v236_v58 = vmul.f32 -0.5, %v718_v23  ;;  %v189_v61 = vmul.f32 %v177_v50, %v693_v39  ;;  %v245_v62 = vmul.f32 -0.5, %v721_v27  ;;  %v284_v5 = vld [vmem:[#allocation11] sm:$0x3f] }
  0x6b   :  { %443 = vlog2.f32 %v269_v44  ;;  %vm302_vm1 = vcmp.ne.f32.partialorder %v296_v48, 0.0  ;;  %v187_v3 = vmax.f32 %v697_v43, 0.0  ;;  %v190_v4 = vmul.f32 %v178_v52, %v695_v42 }
  0x6c   :  { %v193_v6 = vmul.f32 %v181_v55, %v697_v43  ;;  %v228_v7 = vadd.f32 1.0, %v227_v53  ;;  %v272_v8 = vmul.f32 -0.5, %v724_v32  ;;  %v230_v39 = vand.u32 2147483647, %v713_v17  ;;  %vm775_vm6 = vmand %vm302_vm1, %vm116_vm2 }
  0x6d   :  { %v237_v11 = vadd.f32 1.0, %v236_v58  ;;  %v195_v12 = vsub.f32 %v183_v60, %v189_v61  ;;  %v239_v13 = vand.u32 2147483647, %v718_v23  ;;  %v246_v14 = vadd.f32 1.0, %v245_v62 }
  0x6e   :  { %v286_v16 = vunpack.c.0.s8 %v284_v5  ;;  %v196_v42 = vsub.f32 %v184_v63, %v190_v4  ;;  %v248_v18 = vand.u32 2147483647, %v721_v27  ;;  %v287_v20 = vunpack.c.1.s8 %v284_v5 }
  0x6f   :  { %v288_v43 = vunpack.c.2.s8 %v284_v5  ;;  %v199_v22 = vsub.f32 %v187_v3, %v193_v6  ;;  %v229_v24 = vmul.f32 %v713_v17, %v228_v7  ;;  %v273_v25 = vadd.f32 1.0, %v272_v8 }
  0x70   :  { %vm766_vm5 = vcmp.lt.f32.partialorder %v230_v39, 0.0004427343  ;;  %v238_v31 = vmul.f32 %v718_v23, %v237_v11  ;;  %v275_v15 = vand.u32 2147483647, %v724_v32  ;;  %vm779_vm7 = vcmp.lt.f32.partialorder %v239_v13, 0.0004427343 }
  0x71   :  { %vm784_vm8 = vcmp.lt.f32.partialorder %v248_v18, 0.0004427343  ;;  %v293_v41 = vcvt.s32.f32 %v287_v20  ;;  %v294_v44 = vcvt.s32.f32 %v288_v43  ;;  %v612_v13 = vmov 1966171168  }
  0x72   :  { %v434_v36 = vpop.eup %433  ;;  %vm276_vm9 = vcmp.lt.f32.partialorder %v275_v15, 0.0004427343 }
  0x73   :  { %v436_v45 = vpop.eup %435  ;;  %v253_v46 = vmul.f32 0.6931472, %v434_v36  ;;  %v292_v36 = vcvt.s32.f32 %v286_v16  ;;  %vm299_vm11 = vcmp.ne.f32.partialorder %v293_v41, 0.0  ;;  %vm300_vm13 = vcmp.ne.f32.partialorder %v294_v44, 0.0 }
  0x74   :  { %v262_v51 = vmul.f32 0.6931472, %v436_v45 }
  0x75   :  { %v259_v54 = vsel %vm727_vm14, %v256_v35, %v253_v46  ;;  %v438_v26 = vpop.eup %437  ;;  %v247_v35 = vmul.f32 %v721_v27, %v246_v14  ;;  %vm298_vm10 = vcmp.ne.f32.partialorder %v292_v36, 0.0  ;;  %vm309_vm14 = vmand %vm303_vm3, %vm116_vm2  ;;  %v357_v14 = vunpack.c.l.s4 %v612_v13 }
  0x76   :  { %v268_v59 = vsel %vm732_vm15, %v265_v40, %v262_v51  ;;  %v281_v38 = vadd.f32 %v259_v54, %v197_v19  ;;  %v440_v19 = vpop.eup %439  ;;  %vm379_vm2 = vcmp.lt.s32.totalorder %v108_v0, 384 }
  0x77   :  { %v282_v9 = vadd.f32 %v268_v59, %v198_v34  ;;  %v442_v37 = vpop.eup %441  ;;  %v235_v23 = vmul.f32 0.6931472, %v440_v19 }
  0x78   :  { %v313_v21 = vmul.f32 %v295_v33, %v281_v38  ;;  %v226_v33 = vmul.f32 0.6931472, %v438_v26  ;;  %v244_v47 = vmul.f32 0.6931472, %v442_v37  ;;  %v444_v50 = vpop.eup %443 }
  0x79   :  { %v314_v29 = vmul.f32 %v296_v48, %v282_v9  ;;  %v274_v48 = vmul.f32 %v724_v32, %v273_v25  ;;  %v241_v51 = vsel %vm779_vm7, %v238_v31, %v235_v23  ;;  %v271_v54 = vmul.f32 0.6931472, %v444_v50 }
  0x7a   :  { %v319_v45 = vsel %vm762_vm4, %v313_v21, 0.0  ;;  %v232_v46 = vsel %vm766_vm5, %v229_v24, %v226_v33  ;;  %v250_v53 = vsel %vm784_vm8, %v247_v35, %v244_v47  ;;  %v279_v55 = vadd.f32 %v241_v51, %v195_v12 }
  0x7b   :  { %v320_v27 = vsel %vm775_vm6, %v314_v29, 0.0  ;;  %v278_v52 = vadd.f32 %v232_v46, %v194_v10  ;;  %v280_v56 = vadd.f32 %v250_v53, %v196_v42  ;;  %v322_v32 = vsel %vm149_vm12, %v319_v45, 0.0 }
  0x7c   :  { %v277_v58 = vsel %vm276_vm9, %v274_v48, %v271_v54  ;;  %v311_v59 = vmul.f32 %v293_v41, %v279_v55  ;;  %v330_v60 = vsel %vm149_vm12, %v320_v27, 0.0  ;;  %v358_v21 = vunpack.c.0.s8 %v357_v14 }
  0x7d   :  { %v310_v57 = vmul.f32 %v292_v36, %v278_v52  ;;  %v283_v61 = vadd.f32 %v277_v58, %v199_v22  ;;  %v312_v62 = vmul.f32 %v294_v44, %v280_v56 }
  0x7e   :  { %v317_v3 = vsel %vm299_vm11, %v311_v59, 0.0  ;;  %v361_v29 = vsub.s32 %v358_v21, %v674_v1 }
  0x7f   :  { %v316_v63 = vsel %vm298_vm10, %v310_v57, 0.0  ;;  %v315_v5 = vmul.f32 %v736_v49, %v283_v61  ;;  %v331_v38 = vadd.f32 %v330_v60, %v317_v3  ;;  %v318_v6 = vsel %vm300_vm13, %v312_v62, 0.0 }
  0x80   :  { %v323_v4 = vadd.f32 %v322_v32, %v316_v63 }
  0x81   :  { %v321_v8 = vsel %vm309_vm14, %v315_v5, 0.0  ;;  %v332_v9 = vrot.slane %v331_v38, 4 }
  0x82   :  { %v324_v7 = vrot.slane %v323_v4, 4  ;;  %v338_v39 = vsel %vm149_vm12, %v321_v8, 0.0 }
  0x83   :  { %v333_v11 = vadd.f32 %v332_v9, %v331_v38  ;;  %v339_v12 = vadd.f32 %v338_v39, %v318_v6 }
  0x84   :  { %v325_v10 = vadd.f32 %v324_v7, %v323_v4 }
  0x85   :  { %v334_v16 = vrot.slane %v333_v11, 2  ;;  %v340_v42 = vrot.slane %v339_v12, 4 }
  0x86   :  { %v326_v2 = vrot.slane %v325_v10, 2 }
  0x87   :  { %v335_v20 = vadd.f32 %v334_v16, %v333_v11  ;;  %v341_v43 = vadd.f32 %v340_v42, %v339_v12 }
  0x88   :  { %v327_v18 = vadd.f32 %v326_v2, %v325_v10 }
  0x89   :  { %v336_v22 = vrot.slane %v335_v20, 1  ;;  %v342_v24 = vrot.slane %v341_v43, 2 }
  0x8a   :  { %v328_v49 = vrot.slane %v327_v18, 1 }
  0x8b   :  { %v337_v26 = vadd.f32 %v336_v22, %v335_v20  ;;  %v343_v28 = vadd.f32 %v342_v24, %v341_v43 }
  0x8c   :  { %v329_v25 = vadd.f32 %v328_v49, %v327_v18 }
  0x8d   :  { %v344_v30 = vrot.slane %v343_v28, 1 }
  0x8e   :  { %v355_v31 = vcombine.low %v329_v25, %v337_v26 }
  0x8f   :  { %v345_v15 = vadd.f32 %v344_v30, %v343_v28 }
  0x90   :  { %v362_v19 = vrot.slane %v355_v31, %v361_v29 }
  0x91   :  { %v369_v17 = vrot.slane %v345_v15, %v361_v29 }
  0x93   :  { %v370_v33 = vcombine.low %v362_v19, %v369_v17 }
  0x95   :  { %v377_v34 = vrot.slane %v370_v33, %v361_v29 }
  0x97   :  { %381 = vst.msk [vmem:[#allocation13 + $0x2] sm:$0x7] %vm379_vm2, %v377_v34 }
  0x98   :  { %576 = shalt.err (!%p573_p6)
}
  0x99   :  { %391 = dma.vmem_to_hbm [thread:$0]  %s389_s5, 80, %s818_s6, [#allocation4]  }
  0x9a   :  { %593 = dma.done.wait [#allocation4], 80  }
  0x9b   :  { %594 = vsyncadd [#allocation4], 4294967216 }
  0x9c   :  { %395 = vsyncpa [#allocation3], 1 }
  0x9d   :  { %396 = vsyncpa [#allocation6], 1 }
  0x9e   :  { %397 = vsyncpa [#allocation9], 1 }
  0x9f   :  { %398 = vsyncpa [#allocation12], 1 }
  0xa0   :  { %399 = vsyncpa [#allocation4], 1 }

</bundles_post_ra>
